<compile_context>
chip_gen: v6e
topology: v6e:2x2x1
jax: 0.10.0
libtpu: 0.0.40
codegen_flags: <defaults>
</compile_context>

<pallas_src>
import numpy as np
import jax
import jax.numpy as jnp
from jax.experimental import pallas as pl
from jax.experimental.pallas import tpu as pltpu

# ---- static shapes (consistent with fc1's 384 input features) ----------------
H, W = 13, 14                    # input spatial size
KH, KW = 6, 3                    # Conv2d(1, 16, kernel_size=(6, 3))
C_OUT = 16
OH, OW = H - KH + 1, W - KW + 1  # 8, 12   (VALID conv, stride 1)
PH, PW = OH // 2, OW // 2        # 4, 6    (MaxPool2d(2, 2))
FLAT = C_OUT * PH * PW           # 384 -> matches fc1 in_features
NPIX = H * W                     # 182 flattened input pixels per image

TB = 8                           # batch tile per grid step (8..32: no vreg spill)
PK_ROWS = 56                     # packed head-param buffer rows (sublane-aligned slices)

# Static index table (host-side, built once at import): for every input pixel
# (h, w), pool-window position j = dy*2+dx and pool cell p = ph*PW+pw, KIDX gives
# the conv-filter tap k = kh*KW+kw that this pixel feeds, or KH*KW (-> zero
# column) if the pixel is outside that patch.
KIDX = np.full((NPIX, 4, PH * PW), KH * KW, dtype=np.int32)
for dy in range(2):
    for dx in range(2):
        j = dy * 2 + dx
        for ph in range(PH):
            for pw in range(PW):
                p = ph * PW + pw
                for kh in range(KH):
                    for kw in range(KW):
                        h = 2 * ph + dy + kh
                        w = 2 * pw + dx + kw
                        KIDX[h * W + w, j, p] = kh * KW + kw


# ------------------------------ fused Pallas kernel ---------------------------
def cnn_fused_kernel(x_ref, wfull_ref, w1_ref, pk_ref, o_ref):
    # Conv for every output position and every 2x2 pool-window offset at once:
    # (TB,182)bf16 @ (182,1536)bf16 -> f32 accumulation on the MXU.
    x_bf = x_ref[...].astype(jnp.bfloat16)
    act = jnp.dot(x_bf, wfull_ref[...],
                  preferred_element_type=jnp.float32)            # (TB, 1536) f32

    # 2x2 max-pool: VPU max over the four lane-aligned 384-wide blocks.
    pooled = jnp.maximum(jnp.maximum(act[:, 0:FLAT], act[:, FLAT:2 * FLAT]),
                         jnp.maximum(act[:, 2 * FLAT:3 * FLAT],
                                     act[:, 3 * FLAT:4 * FLAT]))  # (TB, 384)

    # Unpack head params from the single packed f32 buffer (static views).
    bc = pk_ref[0:1, :]                # (1, 384)  conv bias, channel-major tiled
    b1 = pk_ref[1:2, 0:32]             # (1, 32)
    b2 = pk_ref[1:2, 32:48]            # (1, 16)
    b3 = pk_ref[1:2, 48:56]            # (1, 8)
    w4 = pk_ref[1:2, 56:64]            # (1, 8)   fc4 weight row
    b4 = pk_ref[1:2, 64:65]            # (1, 1)
    w2 = pk_ref[8:40, 0:16]            # (32, 16) fc2 weight (in, out)
    w3 = pk_ref[40:56, 0:8]            # (16, 8)  fc3 weight (in, out)

    # conv bias after the max + ReLU (exact rewrite of conv->ReLU->maxpool).
    flat = jnp.maximum(pooled + bc, 0.0)                          # (TB, 384)

    # MLP head: fc1(384,32)+ReLU -> fc2(32,16)+ReLU -> fc3(16,8)+ReLU -> fc4(8,1)
    h = jnp.maximum(jnp.dot(flat.astype(jnp.bfloat16), w1_ref[...],
                            preferred_element_type=jnp.float32) + b1, 0.0)
    h = jnp.maximum(jnp.dot(h, w2, preferred_element_type=jnp.float32) + b2, 0.0)
    h = jnp.maximum(jnp.dot(h, w3, preferred_element_type=jnp.float32) + b3, 0.0)
    # fc4: 1-wide output -> keep on the VPU as a reduction instead of a matmul.
    o_ref[...] = jnp.sum(h * w4, axis=1, keepdims=True) + b4


# ------------------------------ parameter prep (runs ONCE) --------------------
def prepare_params(params):
    """All parameter glue hoisted out of the forward pass (exact data movement,
    plus bf16 casts of the two large weight matrices)."""
    wc, bc, w1, b1, w2, b2, w3, b3, w4, b4 = params

    wc_flat = wc.reshape(C_OUT, KH * KW)                          # (16, 18)
    wc_ext = jnp.concatenate(
        [wc_flat, jnp.zeros((C_OUT, 1), jnp.float32)], axis=1)    # (16, 19), last col = 0
    # wfull[h*W+w, j, c, p] = conv weight tap feeding (j, c, p) from pixel (h, w)
    wfull = wc_ext[:, KIDX]                                       # (16, 182, 4, 24) exact gather
    wfull = jnp.transpose(wfull, (1, 2, 0, 3)).reshape(NPIX, 4 * FLAT)
    wfull = wfull.astype(jnp.bfloat16)                            # (182, 1536) bf16

    w1t = w1.T.astype(jnp.bfloat16)                               # (384, 32) bf16

    packed = jnp.zeros((PK_ROWS, FLAT), jnp.float32)
    packed = packed.at[0, :].set(jnp.repeat(bc, PH * PW))         # conv bias, channel-major
    packed = packed.at[1, 0:32].set(b1)
    packed = packed.at[1, 32:48].set(b2)
    packed = packed.at[1, 48:56].set(b3)
    packed = packed.at[1, 56:64].set(w4.reshape(8))
    packed = packed.at[1, 64].set(b4[0])
    packed = packed.at[8:40, 0:16].set(w2.T)                      # (32, 16)
    packed = packed.at[40:56, 0:8].set(w3.T)                      # (16, 8)

    return (wfull, w1t, packed)


# ------------------------------ forward ---------------------------------------
@jax.jit
def cnn_forward(x, prep):
    wfull, w1t, packed = prep
    n = x.shape[0]
    x2 = x.reshape(n, NPIX)                                       # (N, 182), free reshape
    n_pad = ((n + TB - 1) // TB) * TB
    if n_pad != n:
        x2 = jnp.pad(x2, ((0, n_pad - n), (0, 0)))

    out = pl.pallas_call(
        cnn_fused_kernel,
        out_shape=jax.ShapeDtypeStruct((n_pad, 1), jnp.float32),
        grid_spec=pltpu.PrefetchScalarGridSpec(
            num_scalar_prefetch=0,
            grid=(n_pad // TB,),
            in_specs=[
                pl.BlockSpec((TB, NPIX), lambda i: (i, 0)),           # x: batch-tiled
                pl.BlockSpec((NPIX, 4 * FLAT), lambda i: (0, 0)),     # wfull: VMEM-resident
                pl.BlockSpec((FLAT, 32), lambda i: (0, 0)),           # fc1 W: VMEM-resident
                pl.BlockSpec((PK_ROWS, FLAT), lambda i: (0, 0)),      # packed head params
            ],
            out_specs=pl.BlockSpec((TB, 1), lambda i: (i, 0)),
        ),
        compiler_params=pltpu.CompilerParams(
            dimension_semantics=("parallel",)),                       # 2-TC sharding on v7x
    )(x2, wfull, w1t, packed)
    return out[:n]


# ------------------------- pure-JAX reference (f32) ----------------------------
def reference_forward(x, params):
    (wc, bc, w1t, b1, w2t, b2, w3t, b3, w4t, b4) = params
    out = jax.lax.conv_general_dilated(
        x, wc, window_strides=(1, 1), padding="VALID",
        dimension_numbers=("NCHW", "OIHW", "NCHW")) + bc.reshape(1, C_OUT, 1, 1)
    out = jnp.maximum(out, 0.0)
    out = out.reshape(x.shape[0], C_OUT, PH, 2, PW, 2).max(axis=(3, 5))
    out = out.reshape(x.shape[0], -1)
    out = jnp.maximum(out @ w1t.T + b1, 0.0)
    out = jnp.maximum(out @ w2t.T + b2, 0.0)
    out = jnp.maximum(out @ w3t.T + b3, 0.0)
    out = out @ w4t.T + b4
    return out


# --------------------------- parameter init -----------------------------------
def init_params(key):
    # Deterministic synthetic init (xavier-uniform fc weights, uniform conv/biases).
    ks = jax.random.split(key, 10)

    def xavier(k, shape):  # (out_features, in_features), torch layout
        fan_out, fan_in = shape
        lim = float(np.sqrt(6.0 / (fan_in + fan_out)))
        return jax.random.uniform(k, shape, jnp.float32, -lim, lim)

    lim_c = float(np.sqrt(1.0 / (KH * KW)))
    wc = jax.random.uniform(ks[0], (C_OUT, 1, KH, KW), jnp.float32, -lim_c, lim_c)
    bc = jax.random.uniform(ks[1], (C_OUT,), jnp.float32, -lim_c, lim_c)
    w1 = xavier(ks[2], (32, FLAT)); b1 = jax.random.uniform(ks[3], (32,), jnp.float32, -0.05, 0.05)
    w2 = xavier(ks[4], (16, 32));   b2 = jax.random.uniform(ks[5], (16,), jnp.float32, -0.05, 0.05)
    w3 = xavier(ks[6], (8, 16));    b3 = jax.random.uniform(ks[7], (8,), jnp.float32, -0.05, 0.05)
    w4 = xavier(ks[8], (1, 8));     b4 = jax.random.uniform(ks[9], (1,), jnp.float32, -0.05, 0.05)
    return (wc, bc, w1, b1, w2, b2, w3, b3, w4, b4)


if __name__ == "__main__":
    key = jax.random.PRNGKey(0)
    k_x, k_p = jax.random.split(key)
    B = 16                                             # 2 grid steps of TB=8
    x = jax.random.normal(k_x, (B, 1, H, W), jnp.float32)
    params = init_params(k_p)

    prep = prepare_params(params)          # one-time glue, outside the traced forward

    out = jax.block_until_ready(cnn_forward(x, prep))
    ref = jax.block_until_ready(reference_forward(x, params))

    assert out.shape == (B, 1)
    # bf16 weights for the conv/fc1 matmuls -> tolerance loosened from 1e-5 to 2e-2.
    np.testing.assert_allclose(np.asarray(out), np.asarray(ref), rtol=2e-2, atol=2e-2)
    print("KERNEL_OK")
</pallas_src>

<mosaic_0001>
module attributes {stable_mosaic.version = 11 : i64} {
  func.func @cnn_fused_kernel(%arg0: i32, %arg1: memref<8x182xf32, #tpu.memory_space<vmem>>, %arg2: memref<182x1536xbf16, #tpu.memory_space<vmem>>, %arg3: memref<384x32xbf16, #tpu.memory_space<vmem>>, %arg4: memref<56x384xf32, #tpu.memory_space<vmem>>, %arg5: memref<8x1xf32, #tpu.memory_space<vmem>>) attributes {dimension_semantics = [#tpu.dimension_semantics<parallel>], iteration_bounds = array<i64: 2>, scalar_prefetch = 0 : i64, scratch_operands = 0 : i64, tpu.core_type = #tpu.core_type<tc>, window_params = [{transform_indices = @transform_0, window_bounds = array<i64: 8, 182>}, {pipeline_mode = #tpu.pipeline_mode<synchronous>, transform_indices = @transform_1, window_bounds = array<i64: 182, 1536>}, {pipeline_mode = #tpu.pipeline_mode<synchronous>, transform_indices = @transform_2, window_bounds = array<i64: 384, 32>}, {pipeline_mode = #tpu.pipeline_mode<synchronous>, transform_indices = @transform_3, window_bounds = array<i64: 56, 384>}, {transform_indices = @transform_4, window_bounds = array<i64: 8, 1>}]} {
    %c0 = arith.constant 0 : index
    %c0_0 = arith.constant 0 : index
    %0 = vector.load %arg1[%c0, %c0_0] : memref<8x182xf32, #tpu.memory_space<vmem>>, vector<8x182xf32>
    %1 = arith.truncf %0 : vector<8x182xf32> to vector<8x182xbf16>
    %c0_1 = arith.constant 0 : index
    %c0_2 = arith.constant 0 : index
    %2 = vector.load %arg2[%c0_1, %c0_2] : memref<182x1536xbf16, #tpu.memory_space<vmem>>, vector<182x1536xbf16>
    %cst = arith.constant dense<0.000000e+00> : vector<8x1536xf32>
    %3 = tpu.matmul %1, %2, %cst {dimension_numbers = #tpu.dot_dimension_numbers<[1], [0], [0], [1], [0, 0, 1, 1], [], []>} : vector<8x182xbf16>, vector<182x1536xbf16>, vector<8x1536xf32> -> vector<8x1536xf32>
    %4 = vector.extract_strided_slice %3 {offsets = [0, 0], sizes = [8, 384], strides = [1, 1]} : vector<8x1536xf32> to vector<8x384xf32>
    %5 = vector.extract_strided_slice %3 {offsets = [0, 384], sizes = [8, 384], strides = [1, 1]} : vector<8x1536xf32> to vector<8x384xf32>
    %6 = arith.maximumf %4, %5 : vector<8x384xf32>
    %7 = vector.extract_strided_slice %3 {offsets = [0, 768], sizes = [8, 384], strides = [1, 1]} : vector<8x1536xf32> to vector<8x384xf32>
    %8 = vector.extract_strided_slice %3 {offsets = [0, 1152], sizes = [8, 384], strides = [1, 1]} : vector<8x1536xf32> to vector<8x384xf32>
    %9 = arith.maximumf %7, %8 : vector<8x384xf32>
    %10 = arith.maximumf %6, %9 : vector<8x384xf32>
    %c0_3 = arith.constant 0 : index
    %c0_4 = arith.constant 0 : index
    %11 = vector.load %arg4[%c0_3, %c0_4] : memref<56x384xf32, #tpu.memory_space<vmem>>, vector<1x384xf32>
    %c1 = arith.constant 1 : index
    %c0_5 = arith.constant 0 : index
    %12 = vector.load %arg4[%c1, %c0_5] : memref<56x384xf32, #tpu.memory_space<vmem>>, vector<1x32xf32>
    %c1_6 = arith.constant 1 : index
    %c32 = arith.constant 32 : index
    %13 = vector.load %arg4[%c1_6, %c32] : memref<56x384xf32, #tpu.memory_space<vmem>>, vector<1x16xf32>
    %c1_7 = arith.constant 1 : index
    %c48 = arith.constant 48 : index
    %14 = vector.load %arg4[%c1_7, %c48] : memref<56x384xf32, #tpu.memory_space<vmem>>, vector<1x8xf32>
    %c1_8 = arith.constant 1 : index
    %c56 = arith.constant 56 : index
    %15 = vector.load %arg4[%c1_8, %c56] : memref<56x384xf32, #tpu.memory_space<vmem>>, vector<1x8xf32>
    %c1_9 = arith.constant 1 : index
    %c64 = arith.constant 64 : index
    %16 = vector.load %arg4[%c1_9, %c64] : memref<56x384xf32, #tpu.memory_space<vmem>>, vector<1x1xf32>
    %c8 = arith.constant 8 : index
    %c0_10 = arith.constant 0 : index
    %17 = vector.load %arg4[%c8, %c0_10] : memref<56x384xf32, #tpu.memory_space<vmem>>, vector<32x16xf32>
    %c40 = arith.constant 40 : index
    %c0_11 = arith.constant 0 : index
    %18 = vector.load %arg4[%c40, %c0_11] : memref<56x384xf32, #tpu.memory_space<vmem>>, vector<16x8xf32>
    %19 = vector.broadcast %11 : vector<1x384xf32> to vector<8x384xf32>
    %20 = arith.addf %10, %19 : vector<8x384xf32>
    %cst_12 = arith.constant 0.000000e+00 : f32
    %21 = vector.broadcast %cst_12 : f32 to vector<8x384xf32>
    %22 = arith.maximumf %20, %21 : vector<8x384xf32>
    %23 = arith.truncf %22 : vector<8x384xf32> to vector<8x384xbf16>
    %c0_13 = arith.constant 0 : index
    %c0_14 = arith.constant 0 : index
    %24 = vector.load %arg3[%c0_13, %c0_14] : memref<384x32xbf16, #tpu.memory_space<vmem>>, vector<384x32xbf16>
    %cst_15 = arith.constant dense<0.000000e+00> : vector<8x32xf32>
    %25 = tpu.matmul %23, %24, %cst_15 {dimension_numbers = #tpu.dot_dimension_numbers<[1], [0], [0], [1], [0, 0, 1, 1], [], []>} : vector<8x384xbf16>, vector<384x32xbf16>, vector<8x32xf32> -> vector<8x32xf32>
    %26 = vector.broadcast %12 : vector<1x32xf32> to vector<8x32xf32>
    %27 = arith.addf %25, %26 : vector<8x32xf32>
    %cst_16 = arith.constant 0.000000e+00 : f32
    %28 = vector.broadcast %cst_16 : f32 to vector<8x32xf32>
    %29 = arith.maximumf %27, %28 : vector<8x32xf32>
    %cst_17 = arith.constant dense<0.000000e+00> : vector<8x16xf32>
    %30 = tpu.matmul %29, %17, %cst_17 {dimension_numbers = #tpu.dot_dimension_numbers<[1], [0], [0], [1], [0, 0, 1, 1], [], []>} : vector<8x32xf32>, vector<32x16xf32>, vector<8x16xf32> -> vector<8x16xf32>
    %31 = vector.broadcast %13 : vector<1x16xf32> to vector<8x16xf32>
    %32 = arith.addf %30, %31 : vector<8x16xf32>
    %cst_18 = arith.constant 0.000000e+00 : f32
    %33 = vector.broadcast %cst_18 : f32 to vector<8x16xf32>
    %34 = arith.maximumf %32, %33 : vector<8x16xf32>
    %cst_19 = arith.constant dense<0.000000e+00> : vector<8x8xf32>
    %35 = tpu.matmul %34, %18, %cst_19 {dimension_numbers = #tpu.dot_dimension_numbers<[1], [0], [0], [1], [0, 0, 1, 1], [], []>} : vector<8x16xf32>, vector<16x8xf32>, vector<8x8xf32> -> vector<8x8xf32>
    %36 = vector.broadcast %14 : vector<1x8xf32> to vector<8x8xf32>
    %37 = arith.addf %35, %36 : vector<8x8xf32>
    %cst_20 = arith.constant 0.000000e+00 : f32
    %38 = vector.broadcast %cst_20 : f32 to vector<8x8xf32>
    %39 = arith.maximumf %37, %38 : vector<8x8xf32>
    %40 = vector.broadcast %15 : vector<1x8xf32> to vector<8x8xf32>
    %41 = arith.mulf %39, %40 : vector<8x8xf32>
    %cst_21 = arith.constant dense<0.000000e+00> : vector<8xf32>
    %42 = vector.multi_reduction <add>, %41, %cst_21 [1] : vector<8x8xf32> to vector<8xf32>
    %43 = vector.shape_cast %42 : vector<8xf32> to vector<8x1xf32>
    %44 = vector.broadcast %16 : vector<1x1xf32> to vector<8x1xf32>
    %45 = arith.addf %43, %44 : vector<8x1xf32>
    %c0_22 = arith.constant 0 : index
    %c0_23 = arith.constant 0 : index
    %46 = vector.load %arg5[%c0_22, %c0_23] : memref<8x1xf32, #tpu.memory_space<vmem>>, vector<8x1xf32>
    tpu.vector_store %arg5[%c0_22, %c0_23], %45 {strides = array<i32>} : memref<8x1xf32, #tpu.memory_space<vmem>>, vector<8x1xf32>,
    return
  }
  func.func @transform_0(%arg0: i32) -> (i32, i32) {
    %c0_i32 = arith.constant 0 : i32
    %c0_i32_0 = arith.constant 0 : i32
    return %arg0, %c0_i32 : i32, i32
  }
  func.func @transform_1(%arg0: i32) -> (i32, i32) {
    %c0_i32 = arith.constant 0 : i32
    %c0_i32_0 = arith.constant 0 : i32
    %c0_i32_1 = arith.constant 0 : i32
    return %c0_i32, %c0_i32_0 : i32, i32
  }
  func.func @transform_2(%arg0: i32) -> (i32, i32) {
    %c0_i32 = arith.constant 0 : i32
    %c0_i32_0 = arith.constant 0 : i32
    %c0_i32_1 = arith.constant 0 : i32
    return %c0_i32, %c0_i32_0 : i32, i32
  }
  func.func @transform_3(%arg0: i32) -> (i32, i32) {
    %c0_i32 = arith.constant 0 : i32
    %c0_i32_0 = arith.constant 0 : i32
    %c0_i32_1 = arith.constant 0 : i32
    return %c0_i32, %c0_i32_0 : i32, i32
  }
  func.func @transform_4(%arg0: i32) -> (i32, i32) {
    %c0_i32 = arith.constant 0 : i32
    %c0_i32_0 = arith.constant 0 : i32
    return %arg0, %c0_i32 : i32, i32
  }
}

</mosaic_0001>

<bundles_post_ra>
// kernel: cnn_forward.1
= control target key start
LH: loop header
LB: loop body
LE: loop exit
PB: predicated region body
PF: predicated region fallthrough
CT: control target
= control target key end

     0   :  { %9 = vsyncpa [#allocation3], 0  ;;  %s2488_s15 = smov 0   ;;  %s3075_s0 = inlined_call_operand.vmem [shape: f32[16,182], index: 0, kind: input, shape index: {}]   ;;  %s3076_s1 = inlined_call_operand.vmem [shape: bf16[182,1536], index: 1, kind: input, shape index: {}]   ;;  %s3077_s2 = inlined_call_operand.vmem [shape: bf16[384,32], index: 2, kind: input, shape index: {}]   ;;  %s3078_s3 = inlined_call_operand.hbm [shape: f32[56,384], index: 3, kind: input, shape index: {}]   ;;  %s3079_s4 = inlined_call_operand.vmem [shape: f32[16,1], index: 4, kind: output, shape index: {}]  }
   0x1 LB: > { %s2494_s16 = sadd.s32 4294967295, %s2452_s15   ;;  %p1885_p0 = scmp.ge.s32.totalorder %s2452_s15, 1  ;;  %s2452_s15 = sphi %s2488_s15, %s15_s15  }
   0x2   : > { %p135_p1 = scmp.lt.s32.totalorder %s2452_s15, 3  ;;  %s2454_s17 = smov [#allocation2]  }
   0x3   : > { %s153_s18 = sshll.u32 %s2454_s17, 4  ;;  %p2163_p3 = scmp.eq.s32.totalorder %s2494_s16, 0  ;;  %s154_s18 = int_to_ptr.vmem [resolvable:$true] %s153_s18 }
   0x4   : > { %p2498_p2 = pnand %p1885_p0, %p135_p1  ;;  %s2427_s20 = scalar_lea.vmem %s154_s18, 2688 }
   0x5   : > { %p2428_p7 = scmp.ne.s32.totalorder %s154_s18, %s2427_s20  ;;  %p2435_p10 = scmp.lt.s32.totalorder %s154_s18, %s154_s18 }
   0x6   : > { %p2159_p4 = pneg %p2498_p2  ;;  %p2436_p11 = scmp.lt.s32.totalorder %s2427_s20, %s2427_s20 }
   0x8   : > { %p2160_p5 = pnand %p2163_p3, %p2159_p4  ;;  %p2437_p12 = por %p2436_p11, %p2435_p10 }
   0xa   : > { %p2418_p6 = pneg %p2160_p5 }
   0xc   : > { %p2430_p8 = pnand %p2428_p7, %p2418_p6 }
   0xe   : > { %p2431_p9 = pneg %p2430_p8 }
  0x10   : > { %p2438_p13 = pnand %p2437_p12, %p2431_p9 }
  0x12   : > { %2441 = shalt.err (!%p2438_p13)
}
  0x13   : > { %s2455_s21 = smov 384   ;;  %s2456_s22 = smov 24  }
  0x14   : > { %2162 = dma.hbm_to_vmem [thread:$0]  (!%p2160_p5), %s3078_s3, 2688, %s154_s18, [#allocation3], %s2455_s21, %s2455_s21, %s2456_s22  }
  0x15   : > { %177 = sbr.rel (%p2498_p2) target bundleno = 1233 (0x4d1), region = 36 }
  0x1a   : > { %2447 = dma.done.wait (%p2163_p3), [#allocation3], 2688  }
  0x1b   : > { %2449 = vsyncadd (%p2163_p3), [#allocation3], 4294964608  ;;  %v2182_v0 = vld [vmem:[%s3076_s1 + $0x2a4] ss:$48 sps:$4 sm:$0xff]   ;;  %v2184_v1 = vld [vmem:[%s3076_s1 + $0x2ac] ss:$48 sps:$4 sm:$0xff]  }
  0x1c   : > { %1085 = vmatprep.subr.bf16.mxu0 %v2182_v0  ;;  %v2186_v2 = vld [vmem:[%s3076_s1 + $0x2a0] ss:$48 sps:$4 sm:$0xff]   ;;  %v2187_v3 = vld [vmem:[%s3076_s1 + $0x2a8] ss:$48 sps:$4 sm:$0xff]   ;;  %1126 = vmatprep.subr.bf16.mxu1 %v2184_v1  ;;  %v2188_v4 = vld [vmem:[%s3076_s1 + $0x244] ss:$48 sps:$4 sm:$0xff]  }
  0x1d   : > { %1086 = vmatpush1.bf16.msra.mxu0 %v2186_v2  ;;  %1127 = vmatpush1.bf16.msra.mxu1 %v2187_v3  ;;  %v2190_v5 = vld [vmem:[%s3076_s1 + $0x24c] ss:$48 sps:$4 sm:$0xff]   ;;  %v2192_v6 = vld [vmem:[%s3076_s1 + $0x240] ss:$48 sps:$4 sm:$0xff]   ;;  %v2193_v7 = vld [vmem:[%s3076_s1 + $0x248] ss:$48 sps:$4 sm:$0xff]  }
  0x1e   : > { %1087 = vmatprep.subr.bf16.mxu0 %v2188_v4  ;;  %1128 = vmatprep.subr.bf16.mxu1 %v2190_v5  ;;  %v2194_v8 = vld [vmem:[%s3076_s1 + $0x1e4] ss:$48 sps:$4 sm:$0xff]   ;;  %v2196_v9 = vld [vmem:[%s3076_s1 + $0x1ec] ss:$48 sps:$4 sm:$0xff]   ;;  %v2198_v10 = vld [vmem:[%s3076_s1 + $0x1e0] ss:$48 sps:$4 sm:$0xff]  }
  0x1f   : > { %v2199_v11 = vld [vmem:[%s3076_s1 + $0x1e8] ss:$48 sps:$4 sm:$0xff]   ;;  %v2200_v12 = vld [vmem:[%s3076_s1 + $0x184] ss:$48 sps:$4 sm:$0xff]   ;;  %v2202_v13 = vld [vmem:[%s3076_s1 + $0x18c] ss:$48 sps:$4 sm:$0xff]  }
  0x20   : > { %v2204_v14 = vld [vmem:[%s3076_s1 + $0x180] ss:$48 sps:$4 sm:$0xff]   ;;  %v2205_v15 = vld [vmem:[%s3076_s1 + $0x188] ss:$48 sps:$4 sm:$0xff]   ;;  %v2206_v16 = vld [vmem:[%s3076_s1 + $0x124] ss:$48 sps:$4 sm:$0xff]  }
  0x21   : > { %1088 = vmatpush1.bf16.msra.mxu0 %v2192_v6  ;;  %1129 = vmatpush1.bf16.msra.mxu1 %v2193_v7  ;;  %v2208_v17 = vld [vmem:[%s3076_s1 + $0x12c] ss:$48 sps:$4 sm:$0xff]   ;;  %v2210_v18 = vld [vmem:[%s3076_s1 + $0x120] ss:$48 sps:$4 sm:$0xff]   ;;  %v2211_v19 = vld [vmem:[%s3076_s1 + $0x128] ss:$48 sps:$4 sm:$0xff]  }
  0x22   : > { %1089 = vmatprep.subr.bf16.mxu0 %v2194_v8  ;;  %1130 = vmatprep.subr.bf16.mxu1 %v2196_v9  ;;  %p202_p0 = scmp.lt.s32.totalorder %s2494_s16, 1  ;;  %v2212_v20 = vld [vmem:[%s3076_s1 + $0xc4] ss:$48 sps:$4 sm:$0xff]   ;;  %v2214_v21 = vld [vmem:[%s3076_s1 + $0xcc] ss:$48 sps:$4 sm:$0xff]   ;;  %vm1048_vm0 = vcmask 1042432  }
  0x23   : > { %v2216_v22 = vld [vmem:[%s3076_s1 + $0xc0] ss:$48 sps:$4 sm:$0xff]   ;;  %v2217_v23 = vld [vmem:[%s3076_s1 + $0xc8] ss:$48 sps:$4 sm:$0xff]   ;;  %v2218_v24 = vld [vmem:[%s3076_s1 + $0x64] ss:$48 sps:$4 sm:$0xff]  }
  0x24   : > { %s3082_s16 = smov (!%p202_p0, %s2494_s16), 1  ;;  %v2220_v25 = vld [vmem:[%s3076_s1 + $0x6c] ss:$48 sps:$4 sm:$0xff]   ;;  %v2222_v26 = vld [vmem:[%s3076_s1 + $0x60] ss:$48 sps:$4 sm:$0xff]   ;;  %vm1044_vm1 = vcmask 441344  }
  0x25   : > { %1090 = vmatpush1.bf16.msra.mxu0 %v2198_v10  ;;  %1131 = vmatpush1.bf16.msra.mxu1 %v2199_v11  ;;  %s2077_s5 = sshll.u32 %s3082_s16, 4  ;;  %v2223_v27 = vld [vmem:[%s3076_s1 + $0x68] ss:$48 sps:$4 sm:$0xff]   ;;  %v2224_v28 = vld [vmem:[%s3076_s1 + $0x4] ss:$48 sps:$4 sm:$0xff]   ;;  %vm2458_vm2 = vmmov 0  }
  0x26   : > { %1091 = vmatprep.subr.bf16.mxu0 %v2200_v12  ;;  %1132 = vmatprep.subr.bf16.mxu1 %v2202_v13  ;;  %v2226_v29 = vld [vmem:[%s3076_s1 + $0xc] ss:$48 sps:$4 sm:$0xff]   ;;  %v348_v30 = vld [vmem:[%s3076_s1 + $0x420] sm:$0x77]  ;;  %s2623_s22 = scalar_lea.vmem %s3075_s0, %s2077_s5  ;;  %v2229_v33 = vld [vmem:[%s3076_s1 + $0x8] ss:$48 sps:$4 sm:$0xff]  }
  0x27   : > { %v349_v31 = vld [vmem:[%s3076_s1 + $0x428] sm:$0x77]  ;;  %v2228_v32 = vld [vmem:[%s3076_s1] ss:$48 sps:$4 sm:$0xff]   ;;  %v2026_v34 = vcombine.high %v348_v30, %v348_v30  ;;  %v2025_v36 = vcombine.low %v348_v30, %v348_v30  ;;  %v2234_v40 = vld [vmem:[%s3076_s1 + $0x3c4] ss:$48 sps:$4 sm:$0xff]  }
  0x28   : > { %v2028_v35 = vcombine.high %v349_v31, %v349_v31  ;;  %v2027_v37 = vcombine.low %v349_v31, %v349_v31  ;;  %v213_v38 = vld [vmem:[%s2623_s22 + $0x8] sm:$0xff]  ;;  %v2238_v44 = vld [vmem:[%s3076_s1 + $0x3c0] ss:$48 sps:$4 sm:$0xff]   ;;  %v2240_v46 = vld [vmem:[%s3076_s1 + $0x364] ss:$48 sps:$4 sm:$0xff]   ;;  %s2459_s17 = smov 96  }
  0x29   : > { %1092 = vmatpush1.bf16.msra.mxu0 %v2204_v14  ;;  %1133 = vmatpush1.bf16.msra.mxu1 %v2205_v15  ;;  %v2629_v39 = vpack.c.bf16 %v213_v38, %v213_v38  ;;  %v1050_v41 = vsel %vm1048_vm0, %v2025_v36, 0  ;;  %v2236_v43 = vld [vmem:[%s3076_s1 + $0x3cc] ss:$48 sps:$4 sm:$0xff]   ;;  %v2239_v45 = vld [vmem:[%s3076_s1 + $0x3c8] ss:$48 sps:$4 sm:$0xff]   ;;  %v212_v54 = vld [vmem:[%s2623_s22] sm:$0xff] }
  0x2a   : > { %1093 = vmatprep.subr.bf16.mxu0 %v2206_v16  ;;  %1134 = vmatprep.subr.bf16.mxu1 %v2208_v17  ;;  %v1056_v42 = vsel %vm1048_vm0, %v2027_v37, 0  ;;  %v2242_v47 = vld [vmem:[%s3076_s1 + $0x36c] ss:$48 sps:$4 sm:$0xff]   ;;  %v2244_v48 = vld [vmem:[%s3076_s1 + $0x360] ss:$48 sps:$4 sm:$0xff]   ;;  %v2682_v57 = vpack.c.bf16 %v212_v54, %v212_v54  ;;  %vm1650_vm3 = vcmask 261120  }
  0x2b   : > { %2038 = vmatprep.mubr.msk.bf16.mxu0 %vm1044_vm1, %v2629_v39  ;;  %2040 = vmatprep.mubr.msk.bf16.mxu1 %vm1044_vm1, %v2629_v39  ;;  %v2245_v49 = vld [vmem:[%s3076_s1 + $0x368] ss:$48 sps:$4 sm:$0xff]   ;;  %v2246_v50 = vld [vmem:[%s3076_s1 + $0x304] ss:$48 sps:$4 sm:$0xff]   ;;  %v2248_v51 = vld [vmem:[%s3076_s1 + $0x30c] ss:$48 sps:$4 sm:$0xff]  }
  0x2c   : > { %v2250_v52 = vld [vmem:[%s3076_s1 + $0x300] ss:$48 sps:$4 sm:$0xff]   ;;  %v2251_v53 = vld [vmem:[%s3076_s1 + $0x308] ss:$48 sps:$4 sm:$0xff]   ;;  %v2254_v55 = vld [vmem:[%s3076_s1 + $0x2b4] ss:$48 sps:$4 sm:$0xff]  }
  0x2d   : > { %1094 = vmatpush1.bf16.msra.mxu0 %v2210_v18  ;;  %1135 = vmatpush1.bf16.msra.mxu1 %v2211_v19  ;;  %v2257_v56 = vld [vmem:[%s3076_s1 + $0x2bc] ss:$48 sps:$4 sm:$0xff]   ;;  %v2252_v58 = vld [vmem:[%s3076_s1 + $0x2b0] ss:$48 sps:$4 sm:$0xff]   ;;  %v2255_v59 = vld [vmem:[%s3076_s1 + $0x2b8] ss:$48 sps:$4 sm:$0xff]  }
  0x2e   : > { %1095 = vmatprep.subr.bf16.mxu0 %v2212_v20  ;;  %1136 = vmatprep.subr.bf16.mxu1 %v2214_v21  ;;  %v2260_v60 = vld [vmem:[%s3076_s1 + $0x254] ss:$48 sps:$4 sm:$0xff]   ;;  %v2263_v61 = vld [vmem:[%s3076_s1 + $0x25c] ss:$48 sps:$4 sm:$0xff]   ;;  %v2258_v62 = vld [vmem:[%s3076_s1 + $0x250] ss:$48 sps:$4 sm:$0xff]  }
  0x2f   : > { %v2261_v63 = vld [vmem:[%s3076_s1 + $0x258] ss:$48 sps:$4 sm:$0xff]   ;;  %v2266_v0 = vld [vmem:[%s3076_s1 + $0x1f4] ss:$48 sps:$4 sm:$0xff]   ;;  %v2269_v1 = vld [vmem:[%s3076_s1 + $0x1fc] ss:$48 sps:$4 sm:$0xff]  }
  0x30   : > { %v2264_v2 = vld [vmem:[%s3076_s1 + $0x1f0] ss:$48 sps:$4 sm:$0xff]   ;;  %v2267_v3 = vld [vmem:[%s3076_s1 + $0x1f8] ss:$48 sps:$4 sm:$0xff]   ;;  %v2272_v4 = vld [vmem:[%s3076_s1 + $0x194] ss:$48 sps:$4 sm:$0xff]  }
  0x31   : > { %1096 = vmatpush1.bf16.msra.mxu0 %v2216_v22  ;;  %1137 = vmatpush1.bf16.msra.mxu1 %v2217_v23  ;;  %v2275_v5 = vld [vmem:[%s3076_s1 + $0x19c] ss:$48 sps:$4 sm:$0xff]   ;;  %v2270_v6 = vld [vmem:[%s3076_s1 + $0x190] ss:$48 sps:$4 sm:$0xff]   ;;  %v2273_v7 = vld [vmem:[%s3076_s1 + $0x198] ss:$48 sps:$4 sm:$0xff]  }
  0x32   : > { %1097 = vmatprep.subr.bf16.mxu0 %v2218_v24  ;;  %1138 = vmatprep.subr.bf16.mxu1 %v2220_v25  ;;  %v2278_v8 = vld [vmem:[%s3076_s1 + $0x134] ss:$48 sps:$4 sm:$0xff]   ;;  %v2281_v9 = vld [vmem:[%s3076_s1 + $0x13c] ss:$48 sps:$4 sm:$0xff]   ;;  %v2276_v10 = vld [vmem:[%s3076_s1 + $0x130] ss:$48 sps:$4 sm:$0xff]  }
  0x33   : > { %v2279_v11 = vld [vmem:[%s3076_s1 + $0x138] ss:$48 sps:$4 sm:$0xff]   ;;  %v2284_v12 = vld [vmem:[%s3076_s1 + $0xd4] ss:$48 sps:$4 sm:$0xff]   ;;  %v2287_v13 = vld [vmem:[%s3076_s1 + $0xdc] ss:$48 sps:$4 sm:$0xff]  }
  0x34   : > { %v2282_v14 = vld [vmem:[%s3076_s1 + $0xd0] ss:$48 sps:$4 sm:$0xff]   ;;  %v2285_v15 = vld [vmem:[%s3076_s1 + $0xd8] ss:$48 sps:$4 sm:$0xff]   ;;  %v2290_v16 = vld [vmem:[%s3076_s1 + $0x74] ss:$48 sps:$4 sm:$0xff]  }
  0x35   : > { %1098 = vmatpush1.bf16.msra.mxu0 %v2222_v26  ;;  %1139 = vmatpush1.bf16.msra.mxu1 %v2223_v27  ;;  %v2293_v17 = vld [vmem:[%s3076_s1 + $0x7c] ss:$48 sps:$4 sm:$0xff]   ;;  %v2288_v18 = vld [vmem:[%s3076_s1 + $0x70] ss:$48 sps:$4 sm:$0xff]   ;;  %v2291_v19 = vld [vmem:[%s3076_s1 + $0x78] ss:$48 sps:$4 sm:$0xff]  }
  0x36   : > { %1099 = vmatprep.subr.bf16.mxu0 %v2224_v28  ;;  %1140 = vmatprep.subr.bf16.mxu1 %v2226_v29  ;;  %v2296_v20 = vld [vmem:[%s3076_s1 + $0x14] ss:$48 sps:$4 sm:$0xff]   ;;  %v2299_v21 = vld [vmem:[%s3076_s1 + $0x1c] ss:$48 sps:$4 sm:$0xff]   ;;  %v2294_v24 = vld [vmem:[%s3076_s1 + $0x10] ss:$48 sps:$4 sm:$0xff]  }
  0x37   : > { %v350_v22 = vld [vmem:[%s3076_s1 + $0x430] sm:$0x77]  ;;  %v351_v23 = vld [vmem:[%s3076_s1 + $0x438] sm:$0x77]  ;;  %s2460_s18 = smov 80   ;;  %s2461_s19 = smov 72  }
  0x38   : > { %v2297_v25 = vld [vmem:[%s3076_s1 + $0x18] ss:$48 sps:$4 sm:$0xff]   ;;  %v2030_v26 = vcombine.high %v350_v22, %v350_v22  ;;  %v2032_v27 = vcombine.high %v351_v23, %v351_v23  ;;  %v2029_v28 = vcombine.low %v350_v22, %v350_v22  ;;  %v2031_v29 = vcombine.low %v351_v23, %v351_v23  ;;  %v2306_v30 = vld [vmem:[%s3076_s1 + $0x3d4] ss:$48 sps:$4 sm:$0xff]   ;;  %v2315_v37 = vld [vmem:[%s3076_s1 + $0x37c] ss:$48 sps:$4 sm:$0xff]  }
  0x39   : > { %1100 = vmatpush1.bf16.msra.mxu0 %v2228_v32  ;;  %1141 = vmatpush1.bf16.msra.mxu1 %v2229_v33  ;;  %v2309_v33 = vld [vmem:[%s3076_s1 + $0x3dc] ss:$48 sps:$4 sm:$0xff]   ;;  %v2312_v36 = vld [vmem:[%s3076_s1 + $0x374] ss:$48 sps:$4 sm:$0xff]   ;;  %v2310_v38 = vld [vmem:[%s3076_s1 + $0x370] ss:$48 sps:$4 sm:$0xff]  }
  0x3a   : > { %2037 = vmatprep.subr.msk.bf16.mxu0 %vm1048_vm0, %v2026_v34  ;;  %2039 = vmatprep.subr.msk.bf16.mxu1 %vm1048_vm0, %v2028_v35  ;;  %v1062_v31 = vsel %vm1048_vm0, %v2029_v28, 0  ;;  %v1068_v32 = vsel %vm1048_vm0, %v2031_v29, 0  ;;  %v2304_v34 = vld [vmem:[%s3076_s1 + $0x3d0] ss:$48 sps:$4 sm:$0xff]   ;;  %v2307_v35 = vld [vmem:[%s3076_s1 + $0x3d8] ss:$48 sps:$4 sm:$0xff]  }
  0x3b   : > { %v2339_v54 = vld [vmem:[%s3076_s1 + $0x20c] ss:$48 sps:$4 sm:$0xff]   ;;  %v2374_v23 = vld [vmem:[%s3076_s1 + $0x3e0] ss:$48 sps:$4 sm:$0xff]   ;;  %v2383_v28 = vld [vmem:[%s3076_s1 + $0x388] ss:$48 sps:$4 sm:$0xff]  }
  0x3c   : > { %v2379_v22 = vld [vmem:[%s3076_s1 + $0x3ec] ss:$48 sps:$4 sm:$0xff]   ;;  %v2388_v29 = vld [vmem:[%s3076_s1 + $0x324] ss:$48 sps:$4 sm:$0xff]   ;;  %vm1728_vm4 = vcmask 130048   ;;  %vm1807_vm5 = vcmask 64512  }
  0x3d   : > { %1110 = vmatpush2.bf16.msra.mxu0 %v1050_v41  ;;  %1151 = vmatpush2.bf16.msra.mxu1 %v1056_v42  ;;  %v2318_v41 = vld [vmem:[%s3076_s1 + $0x314] ss:$48 sps:$4 sm:$0xff]   ;;  %v2321_v42 = vld [vmem:[%s3076_s1 + $0x31c] ss:$48 sps:$4 sm:$0xff]   ;;  %s2462_s20 = smov 64   ;;  %s1892_s21 = sshll.u32 %s3082_s16, 3 }
  0x3e   : > { %1111 = vmatprep.subr.bf16.mxu0 %v2234_v40  ;;  %1152 = vmatprep.subr.bf16.mxu1 %v2236_v43  ;;  %v2313_v40 = vld [vmem:[%s3076_s1 + $0x378] ss:$48 sps:$4 sm:$0xff]   ;;  %v2316_v43 = vld [vmem:[%s3076_s1 + $0x310] ss:$48 sps:$4 sm:$0xff]   ;;  %s210_s25 = scalar_lea.vmem %s3079_s4, %s1892_s21  ;;  %vm1816_vm6 = vcmask 7168  }
  0x41   : > { %1112 = vmatpush2.bf16.msra.mxu0 %v2238_v44  ;;  %1153 = vmatpush2.bf16.msra.mxu1 %v2239_v45  ;;  %v2319_v44 = vld [vmem:[%s3076_s1 + $0x318] ss:$48 sps:$4 sm:$0xff]   ;;  %v2324_v45 = vld [vmem:[%s3076_s1 + $0x2c4] ss:$48 sps:$4 sm:$0xff]  }
  0x42   : > { %1113 = vmatprep.subr.bf16.mxu0 %v2240_v46  ;;  %1154 = vmatprep.subr.bf16.mxu1 %v2242_v47  ;;  %v2327_v46 = vld [vmem:[%s3076_s1 + $0x2cc] ss:$48 sps:$4 sm:$0xff]   ;;  %v2322_v47 = vld [vmem:[%s3076_s1 + $0x2c0] ss:$48 sps:$4 sm:$0xff]  }
  0x45   : > { %1114 = vmatpush2.bf16.msra.mxu0 %v2244_v48  ;;  %1155 = vmatpush2.bf16.msra.mxu1 %v2245_v49  ;;  %v2325_v48 = vld [vmem:[%s3076_s1 + $0x2c8] ss:$48 sps:$4 sm:$0xff]   ;;  %v2330_v49 = vld [vmem:[%s3076_s1 + $0x264] ss:$48 sps:$4 sm:$0xff]  }
  0x46   : > { %1115 = vmatprep.subr.bf16.mxu0 %v2246_v50  ;;  %1156 = vmatprep.subr.bf16.mxu1 %v2248_v51  ;;  %v2333_v50 = vld [vmem:[%s3076_s1 + $0x26c] ss:$48 sps:$4 sm:$0xff]   ;;  %v2328_v51 = vld [vmem:[%s3076_s1 + $0x260] ss:$48 sps:$4 sm:$0xff]  }
  0x49   : > { %1116 = vmatpush2.bf16.msra.mxu0 %v2250_v52  ;;  %1157 = vmatpush2.bf16.msra.mxu1 %v2251_v53  ;;  %v2331_v52 = vld [vmem:[%s3076_s1 + $0x268] ss:$48 sps:$4 sm:$0xff]   ;;  %v2336_v53 = vld [vmem:[%s3076_s1 + $0x204] ss:$48 sps:$4 sm:$0xff]  }
  0x4a   : > { %1167 = vmatprep.subr.bf16.mxu0 %v2254_v55  ;;  %1208 = vmatprep.subr.bf16.mxu1 %v2257_v56  ;;  %v2334_v55 = vld [vmem:[%s3076_s1 + $0x200] ss:$48 sps:$4 sm:$0xff]   ;;  %v2337_v56 = vld [vmem:[%s3076_s1 + $0x208] ss:$48 sps:$4 sm:$0xff]  }
  0x4c   : > { %1118 = vmatmul.mubr.bf16.vlgmr.msra.gmra.mxu0 %v2682_v57  ;;  %1159 = vmatmul.mubr.bf16.vlgmr.msra.gmra.mxu1 %v2682_v57 }
  0x4d   : > { %1168 = vmatpush1.bf16.msra.mxu0 %v2252_v58  ;;  %1209 = vmatpush1.bf16.msra.mxu1 %v2255_v59  ;;  %v2342_v58 = vld [vmem:[%s3076_s1 + $0x1a4] ss:$48 sps:$4 sm:$0xff]   ;;  %v2345_v59 = vld [vmem:[%s3076_s1 + $0x1ac] ss:$48 sps:$4 sm:$0xff]  }
  0x4e   : > { %1169 = vmatprep.subr.bf16.mxu0 %v2260_v60  ;;  %1210 = vmatprep.subr.bf16.mxu1 %v2263_v61  ;;  %v2340_v60 = vld [vmem:[%s3076_s1 + $0x1a0] ss:$48 sps:$4 sm:$0xff]   ;;  %v2348_v61 = vld [vmem:[%s3076_s1 + $0x144] ss:$48 sps:$4 sm:$0xff]  }
  0x4f   : > { %2042 = vmatprep.mubr.msk.bf16.mxu0 %vm1044_vm1, %v2629_v39  ;;  %2044 = vmatprep.mubr.msk.bf16.mxu1 %vm1044_vm1, %v2629_v39 }
  0x51   : > { %1170 = vmatpush1.bf16.msra.mxu0 %v2258_v62  ;;  %1211 = vmatpush1.bf16.msra.mxu1 %v2261_v63  ;;  %v2351_v62 = vld [vmem:[%s3076_s1 + $0x14c] ss:$48 sps:$4 sm:$0xff]   ;;  %v2346_v63 = vld [vmem:[%s3076_s1 + $0x140] ss:$48 sps:$4 sm:$0xff]  }
  0x52   : > { %1171 = vmatprep.subr.bf16.mxu0 %v2266_v0  ;;  %1212 = vmatprep.subr.bf16.mxu1 %v2269_v1  ;;  %v2349_v0 = vld [vmem:[%s3076_s1 + $0x148] ss:$48 sps:$4 sm:$0xff]   ;;  %v2354_v1 = vld [vmem:[%s3076_s1 + $0xe4] ss:$48 sps:$4 sm:$0xff]  }
  0x55   : > { %1172 = vmatpush1.bf16.msra.mxu0 %v2264_v2  ;;  %1213 = vmatpush1.bf16.msra.mxu1 %v2267_v3  ;;  %v2357_v2 = vld [vmem:[%s3076_s1 + $0xec] ss:$48 sps:$4 sm:$0xff]   ;;  %v2352_v3 = vld [vmem:[%s3076_s1 + $0xe0] ss:$48 sps:$4 sm:$0xff]  }
  0x56   : > { %1173 = vmatprep.subr.bf16.mxu0 %v2272_v4  ;;  %1214 = vmatprep.subr.bf16.mxu1 %v2275_v5  ;;  %v2355_v4 = vld [vmem:[%s3076_s1 + $0xe8] ss:$48 sps:$4 sm:$0xff]   ;;  %v2360_v5 = vld [vmem:[%s3076_s1 + $0x84] ss:$48 sps:$4 sm:$0xff]  }
  0x59   : > { %1174 = vmatpush1.bf16.msra.mxu0 %v2270_v6  ;;  %1215 = vmatpush1.bf16.msra.mxu1 %v2273_v7  ;;  %v2363_v6 = vld [vmem:[%s3076_s1 + $0x8c] ss:$48 sps:$4 sm:$0xff]   ;;  %v2358_v7 = vld [vmem:[%s3076_s1 + $0x80] ss:$48 sps:$4 sm:$0xff]  }
  0x5a   : > { %1175 = vmatprep.subr.bf16.mxu0 %v2278_v8  ;;  %1216 = vmatprep.subr.bf16.mxu1 %v2281_v9  ;;  %v2361_v8 = vld [vmem:[%s3076_s1 + $0x88] ss:$48 sps:$4 sm:$0xff]   ;;  %v2366_v9 = vld [vmem:[%s3076_s1 + $0x24] ss:$48 sps:$4 sm:$0xff]  }
  0x5d   : > { %1176 = vmatpush1.bf16.msra.mxu0 %v2276_v10  ;;  %1217 = vmatpush1.bf16.msra.mxu1 %v2279_v11  ;;  %v2369_v10 = vld [vmem:[%s3076_s1 + $0x2c] ss:$48 sps:$4 sm:$0xff]   ;;  %v352_v11 = vld [vmem:[%s3076_s1 + $0x440] sm:$0x77] }
  0x5e   : > { %1177 = vmatprep.subr.bf16.mxu0 %v2284_v12  ;;  %1218 = vmatprep.subr.bf16.mxu1 %v2287_v13  ;;  %v353_v12 = vld [vmem:[%s3076_s1 + $0x448] sm:$0x77]  ;;  %v2364_v13 = vld [vmem:[%s3076_s1 + $0x20] ss:$48 sps:$4 sm:$0xff]  }
  0x61   : > { %1178 = vmatpush1.bf16.msra.mxu0 %v2282_v14  ;;  %1219 = vmatpush1.bf16.msra.mxu1 %v2285_v15  ;;  %v2367_v14 = vld [vmem:[%s3076_s1 + $0x28] ss:$48 sps:$4 sm:$0xff]   ;;  %v2034_v15 = vcombine.high %v352_v11, %v352_v11 }
  0x62   : > { %1179 = vmatprep.subr.bf16.mxu0 %v2290_v16  ;;  %1220 = vmatprep.subr.bf16.mxu1 %v2293_v17  ;;  %v2036_v16 = vcombine.high %v353_v12, %v353_v12  ;;  %v2033_v17 = vcombine.low %v352_v11, %v352_v11  ;;  %v1349_v11 = vlaneseq }
  0x65   : > { %1180 = vmatpush1.bf16.msra.mxu0 %v2288_v18  ;;  %1221 = vmatpush1.bf16.msra.mxu1 %v2291_v19  ;;  %v2035_v18 = vcombine.low %v353_v12, %v353_v12  ;;  %v1074_v19 = vsel %vm1048_vm0, %v2033_v17, 0  ;;  %v1350_v12 = vshrl.u32 %v1349_v11, 7 }
  0x66   : > { %1181 = vmatprep.subr.bf16.mxu0 %v2296_v20  ;;  %1222 = vmatprep.subr.bf16.mxu1 %v2299_v21  ;;  %v2376_v21 = vld [vmem:[%s3076_s1 + $0x3e4] ss:$48 sps:$4 sm:$0xff]  }
  0x67   : > { %v1080_v20 = vsel %vm1048_vm0, %v2035_v18, 0 }
  0x69   : > { %1182 = vmatpush1.bf16.msra.mxu0 %v2294_v24  ;;  %1223 = vmatpush1.bf16.msra.mxu1 %v2297_v25  ;;  %v2377_v24 = vld [vmem:[%s3076_s1 + $0x3e8] ss:$48 sps:$4 sm:$0xff]   ;;  %v2382_v25 = vld [vmem:[%s3076_s1 + $0x384] ss:$48 sps:$4 sm:$0xff]  }
  0x6a   : > { %2041 = vmatprep.subr.msk.bf16.mxu0 %vm1048_vm0, %v2030_v26  ;;  %2043 = vmatprep.subr.msk.bf16.mxu1 %vm1048_vm0, %v2032_v27  ;;  %v2385_v26 = vld [vmem:[%s3076_s1 + $0x38c] ss:$48 sps:$4 sm:$0xff]   ;;  %v2380_v27 = vld [vmem:[%s3076_s1 + $0x380] ss:$48 sps:$4 sm:$0xff]  }
  0x6d   : > { %1192 = vmatpush2.bf16.msra.mxu0 %v1062_v31  ;;  %1233 = vmatpush2.bf16.msra.mxu1 %v1068_v32  ;;  %v2386_v31 = vld [vmem:[%s3076_s1 + $0x320] ss:$48 sps:$4 sm:$0xff]   ;;  %v2389_v32 = vld [vmem:[%s3076_s1 + $0x328] ss:$48 sps:$4 sm:$0xff]  }
  0x6e   : > { %1193 = vmatprep.subr.bf16.mxu0 %v2306_v30  ;;  %1234 = vmatprep.subr.bf16.mxu1 %v2309_v33  ;;  %v2391_v30 = vld [vmem:[%s3076_s1 + $0x32c] ss:$48 sps:$4 sm:$0xff]  }
  0x6f   : > { %v2392_v33 = vld [vmem:[%s3077_s2 + $0x78] sm:$0xff]  }
  0x71   : > { %1194 = vmatpush2.bf16.msra.mxu0 %v2304_v34  ;;  %1235 = vmatpush2.bf16.msra.mxu1 %v2307_v35  ;;  %v2393_v34 = vld [vmem:[%s3077_s2 + $0x38] sm:$0xff]  }
  0x72   : > { %1195 = vmatprep.subr.bf16.mxu0 %v2312_v36  ;;  %1236 = vmatprep.subr.bf16.mxu1 %v2315_v37  ;;  %v2394_v35 = vld [vmem:[%s3077_s2 + $0xb8] sm:$0xff]   ;;  %v2457_v36 = vmov 0.0   ;;  %v2395_v37 = vld [vmem:[%s3077_s2 + $0x70] sm:$0xff]  }
  0x75   : > { %1196 = vmatpush2.bf16.msra.mxu0 %v2310_v38  ;;  %1237 = vmatpush2.bf16.msra.mxu1 %v2313_v40  ;;  %v2396_v38 = vld [vmem:[%s3077_s2 + $0x30] sm:$0xff]   ;;  %v2398_v40 = vld [vmem:[%s3077_s2 + $0x68] sm:$0xff]  }
  0x76   : > { %1197 = vmatprep.subr.bf16.mxu0 %v2318_v41  ;;  %1238 = vmatprep.subr.bf16.mxu1 %v2321_v42  ;;  %v2400_v41 = vld [vmem:[%s3077_s2 + $0xa8] sm:$0xff]  }
  0x77   : > { %v2399_v42 = vld [vmem:[%s3077_s2 + $0x28] sm:$0xff]  }
  0x79   : > { %1198 = vmatpush2.bf16.msra.mxu0 %v2316_v43  ;;  %1239 = vmatpush2.bf16.msra.mxu1 %v2319_v44  ;;  %v2401_v43 = vld [vmem:[%s3077_s2 + $0x60] sm:$0xff]  }
  0x7a   : > { %1249 = vmatprep.subr.bf16.mxu0 %v2324_v45  ;;  %1290 = vmatprep.subr.bf16.mxu1 %v2327_v46  ;;  %v2403_v44 = vld [vmem:[%s3077_s2 + $0xa0] sm:$0xff]   ;;  %v2404_v46 = vld [vmem:[%s3077_s2 + $0x58] sm:$0xff]  }
  0x7b   : > { %v2402_v45 = vld [vmem:[%s3077_s2 + $0x20] sm:$0xff]  }
  0x7c   : > { %1200 = vmatmul.mubr.bf16.vlgmr.msra.gmra.mxu0 %v2682_v57  ;;  %1241 = vmatmul.mubr.bf16.vlgmr.msra.gmra.mxu1 %v2682_v57 }
  0x7d   : > { %1250 = vmatpush1.bf16.msra.mxu0 %v2322_v47  ;;  %1291 = vmatpush1.bf16.msra.mxu1 %v2325_v48  ;;  %v2406_v47 = vld [vmem:[%s3077_s2 + $0x98] sm:$0xff]  }
  0x7e   : > { %1251 = vmatprep.subr.bf16.mxu0 %v2330_v49  ;;  %1292 = vmatprep.subr.bf16.mxu1 %v2333_v50  ;;  %v2405_v48 = vld [vmem:[%s3077_s2 + $0x18] sm:$0xff]   ;;  %v2407_v49 = vld [vmem:[%s3077_s2 + $0x50] sm:$0xff]  }
  0x7f   : > { %2046 = vmatprep.mubr.msk.bf16.mxu0 %vm1044_vm1, %v2629_v39  ;;  %2048 = vmatprep.mubr.msk.bf16.mxu1 %vm1044_vm1, %v2629_v39  ;;  %v2343_v39 = vld [vmem:[%s3076_s1 + $0x1a8] ss:$48 sps:$4 sm:$0xff]   ;;  %v2408_v50 = vld [vmem:[%s3077_s2 + $0x10] sm:$0xff]  }
  0x81   : > { %1252 = vmatpush1.bf16.msra.mxu0 %v2328_v51  ;;  %1293 = vmatpush1.bf16.msra.mxu1 %v2331_v52  ;;  %v2409_v51 = vld [vmem:[%s3077_s2 + $0x90] sm:$0xff]   ;;  %v2410_v52 = vld [vmem:[%s3077_s2 + $0x48] sm:$0xff]  }
  0x82   : > { %1253 = vmatprep.subr.bf16.mxu0 %v2336_v53  ;;  %1294 = vmatprep.subr.bf16.mxu1 %v2339_v54  ;;  %v2411_v53 = vld [vmem:[%s3077_s2 + $0x8] sm:$0xff]  }
  0x83   : > { %v2412_v54 = vld [vmem:[%s3077_s2 + $0x88] sm:$0xff]  }
  0x85   : > { %1254 = vmatpush1.bf16.msra.mxu0 %v2334_v55  ;;  %1295 = vmatpush1.bf16.msra.mxu1 %v2337_v56  ;;  %v2413_v55 = vld [vmem:[%s3077_s2 + $0x40] sm:$0xff]  }
  0x86   : > { %1255 = vmatprep.subr.bf16.mxu0 %v2342_v58  ;;  %1296 = vmatprep.subr.bf16.mxu1 %v2345_v59  ;;  %v2414_v56 = vld [vmem:[%s3077_s2] sm:$0xff]  }
  0x87   : > { %v2415_v58 = vld [vmem:[%s3077_s2 + $0x80] sm:$0xff]  }
  0x89   : > { %1256 = vmatpush1.bf16.msra.mxu0 %v2340_v60  ;;  %1297 = vmatpush1.bf16.msra.mxu1 %v2343_v39 }
  0x8a   : > { %1257 = vmatprep.subr.bf16.mxu0 %v2348_v61  ;;  %1298 = vmatprep.subr.bf16.mxu1 %v2351_v62 }
  0x8d   : > { %1258 = vmatpush1.bf16.msra.mxu0 %v2346_v63  ;;  %1299 = vmatpush1.bf16.msra.mxu1 %v2349_v0 }
  0x8e   : > { %1259 = vmatprep.subr.bf16.mxu0 %v2354_v1  ;;  %1300 = vmatprep.subr.bf16.mxu1 %v2357_v2 }
  0x91   : > { %1260 = vmatpush1.bf16.msra.mxu0 %v2352_v3  ;;  %1301 = vmatpush1.bf16.msra.mxu1 %v2355_v4 }
  0x92   : > { %1261 = vmatprep.subr.bf16.mxu0 %v2360_v5  ;;  %1302 = vmatprep.subr.bf16.mxu1 %v2363_v6 }
  0x95   : > { %1262 = vmatpush1.bf16.msra.mxu0 %v2358_v7  ;;  %1303 = vmatpush1.bf16.msra.mxu1 %v2361_v8 }
  0x96   : > { %1263 = vmatprep.subr.bf16.mxu0 %v2366_v9  ;;  %1304 = vmatprep.subr.bf16.mxu1 %v2369_v10 }
  0x99   : > { %1264 = vmatpush1.bf16.msra.mxu0 %v2364_v13  ;;  %1305 = vmatpush1.bf16.msra.mxu1 %v2367_v14  ;;  %v1355_v13 = vsub.s32 1, %v1350_v12  ;;  %v1340_v14 = vld [vmem:[#allocation2] ss:$8 sm:$0x7] }
  0x9a   : > { %2045 = vmatprep.subr.msk.bf16.mxu0 %vm1048_vm0, %v2034_v15  ;;  %2047 = vmatprep.subr.msk.bf16.mxu1 %vm1048_vm0, %v2036_v16  ;;  %v1351_v15 = vsub.s32 0, %v1350_v12  ;;  %v1359_v16 = vsub.s32 2, %v1350_v12 }
  0x9d   : > { %1274 = vmatpush2.bf16.msra.mxu0 %v1074_v19  ;;  %1315 = vmatpush2.bf16.msra.mxu1 %v1080_v20 }
  0x9e   : > { %1275 = vmatprep.subr.bf16.mxu0 %v2376_v21  ;;  %1316 = vmatprep.subr.bf16.mxu1 %v2379_v22  ;;  %v1356_v21 = vrot.slane %v1340_v14, %v1355_v13 }
  0xa1   : > { %1276 = vmatpush2.bf16.msra.mxu0 %v2374_v23  ;;  %1317 = vmatpush2.bf16.msra.mxu1 %v2377_v24  ;;  %v1352_v23 = vrot.slane %v1340_v14, %v1351_v15 }
  0xa2   : > { %1277 = vmatprep.subr.bf16.mxu0 %v2382_v25  ;;  %1318 = vmatprep.subr.bf16.mxu1 %v2385_v26  ;;  %v1360_v25 = vrot.slane %v1340_v14, %v1359_v16 }
  0xa5   : > { %1278 = vmatpush2.bf16.msra.mxu0 %v2380_v27  ;;  %1319 = vmatpush2.bf16.msra.mxu1 %v2383_v28 }
  0xa6   : > { %1279 = vmatprep.subr.bf16.mxu0 %v2388_v29  ;;  %1320 = vmatprep.subr.bf16.mxu1 %v2391_v30 }
  0xa9   : > { %1280 = vmatpush2.bf16.msra.mxu0 %v2386_v31  ;;  %1321 = vmatpush2.bf16.msra.mxu1 %v2389_v32 }
  0xaa   : > { %2117 = vmatprep.subr.bf16.mxu1 %v2457_v36  ;;  %2078 = vmatprep.subr.bf16.mxu0 %v2392_v33 }
  0xac   : > { %1282 = vmatmul.mubr.bf16.vlgmr.msra.gmra.mxu0 %v2682_v57  ;;  %1323 = vmatmul.mubr.bf16.vlgmr.msra.gmra.mxu1 %v2682_v57  ;;  %v2397_v57 = vld [vmem:[%s3077_s2 + $0xb0] sm:$0xff]  }
  0xad   : > { %2118 = vmatpush3.bf16.msra.mxu1 %v2394_v35  ;;  %2079 = vmatpush3.bf16.msra.mxu0 %v2393_v34 }
  0xae   : > { %2119 = vmatprep.subr.bf16.mxu1 %v2457_v36  ;;  %2080 = vmatprep.subr.bf16.mxu0 %v2395_v37 }
  0xaf   : > { %2133 = vmatprep.mubr.msk.bf16.mxu1 %vm2458_vm2, %v2457_v36 }
  0xb1   : > { %2120 = vmatpush3.bf16.msra.mxu1 %v2397_v57  ;;  %2081 = vmatpush3.bf16.msra.mxu0 %v2396_v38 }
  0xb2   : > { %2121 = vmatprep.subr.bf16.mxu1 %v2457_v36  ;;  %2082 = vmatprep.subr.bf16.mxu0 %v2398_v40 }
  0xb5   : > { %2122 = vmatpush3.bf16.msra.mxu1 %v2400_v41  ;;  %2083 = vmatpush3.bf16.msra.mxu0 %v2399_v42 }
  0xb6   : > { %2123 = vmatprep.subr.bf16.mxu1 %v2457_v36  ;;  %2084 = vmatprep.subr.bf16.mxu0 %v2401_v43 }
  0xb9   : > { %2124 = vmatpush3.bf16.msra.mxu1 %v2403_v44  ;;  %2085 = vmatpush3.bf16.msra.mxu0 %v2402_v45 }
  0xba   : > { %2125 = vmatprep.subr.bf16.mxu1 %v2457_v36  ;;  %2086 = vmatprep.subr.bf16.mxu0 %v2404_v46  ;;  %v1345_v46 = vld [vmem:[#allocation2 + $0x60] sm:$0xff] }
  0xbd   : > { %2126 = vmatpush3.bf16.msra.mxu1 %v2406_v47  ;;  %2087 = vmatpush3.bf16.msra.mxu0 %v2405_v48  ;;  %v1344_v47 = vld [vmem:[#allocation2 + $0x48] sm:$0xff]  ;;  %v1343_v48 = vld [vmem:[#allocation2 + $0x30] sm:$0xff] }
  0xbe   : > { %2127 = vmatprep.subr.bf16.mxu1 %v2457_v36  ;;  %2088 = vmatprep.subr.bf16.mxu0 %v2407_v49  ;;  %v1342_v49 = vld [vmem:[#allocation2 + $0x18] sm:$0xff] }
  0xc1   : > { %2089 = vmatpush3.bf16.msra.mxu0 %v2408_v50  ;;  %2128 = vmatpush3.bf16.msra.mxu1 %v2409_v51  ;;  %v1341_v50 = vld [vmem:[#allocation2 + $0x1] ss:$0 sm:$0xff]  ;;  %v1347_v51 = vld [vmem:[#allocation2 + $0x90] sm:$0xff] }
  0xc2   : > { %2129 = vmatprep.subr.bf16.mxu1 %v2457_v36  ;;  %2090 = vmatprep.subr.bf16.mxu0 %v2410_v52 }
  0xc3   : > { %1647 = vrot.lane.b32.xlu0 %v1341_v50, %s2459_s17  ;;  %1803 = vrot.lane.b32.xlu1 %v1341_v50, %s2461_s19 }
  0xc5   : > { %2091 = vmatpush3.bf16.msra.mxu0 %v2411_v53  ;;  %2130 = vmatpush3.bf16.msra.mxu1 %v2412_v54 }
  0xc6   : > { %2131 = vmatprep.subr.bf16.mxu1 %v2457_v36  ;;  %2092 = vmatprep.subr.bf16.mxu0 %v2413_v55 }
  0xc7   : > { %1725 = vrot.lane.b32.xlu0 %v1341_v50, %s2460_s18 }
  0xc9   : > { %2093 = vmatpush3.bf16.msra.mxu0 %v2414_v56  ;;  %2132 = vmatpush3.bf16.msra.mxu1 %v2415_v58 }
  0xca   : > { %2137 = vmatprep.subr.mxu0 %v2457_v36  ;;  %2148 = vmatprep.subr.mxu1 %v2457_v36 }
 0x10c   : > { %v1119_v59 = vpop.f32.mrf.mxu0  ;;  %v1160_v60 = vpop.f32.mrf.mxu1 }
 0x10e   : > { %v1121_v39 = vpop.f32.mrf.mxu0  ;;  %v1162_v61 = vpop.f32.mrf.mxu1 }
 0x10f   : > { %v1331_v62 = vmax.f32 %v1119_v59, %v1162_v61 }
 0x110   : > { %v1123_v63 = vpop.f32.mrf.mxu0  ;;  %v1164_v0 = vpop.f32.mrf.mxu1 }
 0x111   : > { %v1346_v0 = vld [vmem:[#allocation2 + $0x78] sm:$0xff] }
 0x112   : > { %v1124_v1 = vpop.f32.mrf.mxu0  ;;  %v1165_v2 = vpop.f32.mrf.mxu1 }
 0x13c   : > { %v1201_v3 = vpop.f32.mrf.mxu0  ;;  %v1242_v4 = vpop.f32.mrf.mxu1 }
 0x13d   : > { %v1332_v19 = vmax.f32 %v1121_v39, %v1201_v3 }
 0x13e   : > { %v1203_v5 = vpop.f32.mrf.mxu0  ;;  %v1244_v6 = vpop.f32.mrf.mxu1 }
 0x13f   : > { %v1333_v26 = vmax.f32 %v1160_v60, %v1203_v5 }
 0x140   : > { %v1205_v7 = vpop.f32.mrf.mxu0  ;;  %v1246_v8 = vpop.f32.mrf.mxu1 }
 0x142   : > { %v1206_v9 = vpop.f32.mrf.mxu0  ;;  %v1247_v10 = vpop.f32.mrf.mxu1 }
 0x143   : > { %v1804_v9 = vpop.permute.xlu1 %1803 }
 0x16c   : > { %v1283_v17 = vpop.f32.mrf.mxu0  ;;  %v1324_v18 = vpop.f32.mrf.mxu1 }
 0x16d   : > { %v1335_v20 = vmax.f32 %v1244_v6, %v1324_v18 }
 0x16e   : > { %v1285_v22 = vpop.f32.mrf.mxu0  ;;  %v1326_v24 = vpop.f32.mrf.mxu1 }
 0x16f   : > { %v1338_v27 = vmax.f32 %v1332_v19, %v1335_v20  ;;  %v1334_v28 = vmax.f32 %v1242_v4, %v1285_v22  ;;  %v1336_v29 = vmax.f32 %v1283_v17, %v1326_v24 }
 0x170   : > { %v1287_v30 = vpop.f32.mrf.mxu0  ;;  %v1328_v31 = vpop.f32.mrf.mxu1 }
 0x171   : > { %v1365_v32 = vadd.f32 %v1356_v21, %v1338_v27  ;;  %v1337_v33 = vmax.f32 %v1331_v62, %v1334_v28  ;;  %v1339_v34 = vmax.f32 %v1333_v26, %v1336_v29 }
 0x172   : > { %v1288_v35 = vpop.f32.mrf.mxu0  ;;  %v1329_v37 = vpop.f32.mrf.mxu1 }
 0x173   : > { %v1364_v57 = vadd.f32 %v1352_v23, %v1337_v33  ;;  %v1366_v38 = vadd.f32 %v1360_v25, %v1339_v34  ;;  %v1368_v40 = vmax.f32 %v1365_v32, 0.0 }
 0x175   : > { %v1367_v41 = vmax.f32 %v1364_v57, 0.0  ;;  %v1369_v42 = vmax.f32 %v1366_v38, 0.0  ;;  %v1371_v43 = vpack.c.bf16 %v1368_v40, %v1368_v40 }
 0x177   : > { %v1370_v44 = vpack.c.bf16 %v1367_v41, %v1367_v41  ;;  %v1372_v45 = vpack.c.bf16 %v1369_v42, %v1369_v42  ;;  %1597 = vmatprep.mubr.bf16.mxu0 %v1371_v43 }
 0x179   : > { %1598 = vmatmul.mubr.bf16.vlgmr.msra.gmra.mxu0 %v1370_v44  ;;  %2134 = vmatmul.mubr.bf16.vlgmr.msra.gmra.mxu1 %v1372_v45 }
 0x17a   : > { %2145 = vmatprep.mubr.msk.f32.mxu0 %vm2458_vm2, %v2457_v36  ;;  %2152 = vmatprep.mubr.msk.f32.mxu1 %vm2458_vm2, %v2457_v36 }
 0x17b   : > { %2138 = vmatpush3.msra.mxu0 %v1345_v46  ;;  %2149 = vmatpush3.msra.mxu1 %v1347_v51 }
 0x17c   : > { %2139 = vmatprep.subr.mxu0 %v2457_v36  ;;  %2150 = vmatprep.subr.mxu1 %v2457_v36 }
 0x17d   : > { %2140 = vmatpush3.msra.mxu0 %v1344_v47  ;;  %2151 = vmatpush3.msra.mxu1 %v1346_v0 }
 0x17e   : > { %2141 = vmatprep.subr.mxu0 %v2457_v36 }
 0x17f   : > { %2142 = vmatpush3.msra.mxu0 %v1343_v48 }
 0x180   : > { %2143 = vmatprep.subr.mxu0 %v2457_v36  ;;  %v1648_v36 = vpop.permute.xlu0 %1647 }
 0x181   : > { %2144 = vmatpush3.msra.mxu0 %v1342_v49 }
 0x184   : > { %v1726_v5 = vpop.permute.xlu0 %1725 }
 0x239   : > { %v2094_v52 = vpop.f32.mrf.mxu0  ;;  %v1639_v53 = vpop.f32.mrf.mxu1 }
 0x23b   : > { %v2095_v54 = vpop.f32.mrf.mxu0  ;;  %v2135_v55 = vpop.f32.mrf.mxu1 }
 0x23c   : > { %v2096_v56 = vadd.f32 %v2095_v54, %v2094_v52 }
 0x23d   : > { %v2097_v58 = vpop.f32.mrf.mxu0  ;;  %v1642_v59 = vpop.f32.mrf.mxu1 }
 0x23e   : > { %v1600_v60 = vadd.f32 %v2096_v56, %v1341_v50 }
 0x23f   : > { %v2098_v39 = vpop.f32.mrf.mxu0  ;;  %v2136_v61 = vpop.f32.mrf.mxu1 }
 0x240   : > { %v1640_v62 = vadd.f32 %v1639_v53, %v1600_v60 }
 0x242   : > { %v1645_v63 = vmax.f32 %v1640_v62, 0.0 }
 0x244   : > { %2146 = vmatmul.mubr.msk.f32.vlgmr.msra.gmra.mxu0 %vm1650_vm3, %v1645_v63 }
 0x304   : > { %v1720_v1 = vpop.f32.mrf.mxu0 }
 0x305   : > { %v1721_v2 = vadd.f32 %v1720_v1, %v1648_v36 }
 0x306   : > { %v2147_v3 = vpop.f32.mrf.mxu0 }
 0x307   : > { %v1724_v4 = vmax.f32 %v1721_v2, 0.0 }
 0x309   : > { %2153 = vmatmul.mubr.msk.f32.vlgmr.msra.gmra.mxu1 %vm1728_vm4, %v1724_v4 }
 0x3c9   : > { %v1798_v6 = vpop.f32.mrf.mxu1 }
 0x3ca   : > { %v1799_v7 = vadd.f32 %v1798_v6, %v1726_v5 }
 0x3cb   : > { %v2154_v8 = vpop.f32.mrf.mxu1 }
 0x3cc   : > { %v1802_v10 = vmax.f32 %v1799_v7, 0.0 }
 0x3ce   : > { %v1806_v11 = vmul.f32 %v1804_v9, %v1802_v10 }
 0x3d0   : > { %v1808_v12 = vsel %vm1807_vm5, %v1806_v11, 0.0 }
 0x3d1   : > { %1809 = vadd.xlane.f32.xlu1 %v1808_v12 }
 0x45a   : > { %v1810_v13 = vpop.xlane.xlu1 %1809 }
 0x45b   : > { %v1811_v14 = vadd.f32 %v1810_v13, %v1341_v50 }
 0x45d   : > { %1813 = vrot.lane.b32.xlu0 %v1811_v14, %s2462_s20 }
 0x4cf   : > { %v1814_v15 = vpop.permute.xlu0 %1813 }
 0x4d0   : > { %1817 = vst.msk [vmem:[%s210_s25] sm:$0xff] %vm1816_vm6, %v1814_v15 }
 0x4d1 PF: > { %s15_s15 = sadd.s32 1, %s2452_s15  }
 0x4d2   : > { %p12_p1 = scmp.ge.s32.totalorder %s15_s15, 4  }
 0x4d4   :  { %14 = sbr.rel (!%p12_p1) target bundleno = 1 (0x1), region = 71 }
 0x4d9   :  { %1837 = vsyncpa [#allocation3], 1 }
 0x4da   :  { %1839 = vsyncpa [#allocation3 + $0x1], 1 }

</bundles_post_ra>
